<compile_context>
chip_gen: v7x
topology: tpu7x:2x2x1
jax: 0.10.0
libtpu: 0.0.40
codegen_flags: <defaults>
</compile_context>

<pallas_src>
import functools
import math

import jax
import jax.numpy as jnp
from jax.experimental import pallas as pl
from jax.experimental.pallas import tpu as pltpu


# --------------------------------------------------------------------------- #
# Small helpers
# --------------------------------------------------------------------------- #
def _cdiv(a: int, b: int) -> int:
    return -(-a // b)


def _round_up(x: int, m: int) -> int:
    return _cdiv(x, m) * m


def _balanced_tile(size: int, max_tile: int, align: int):
    """Padding-minimising tile: fewest tiles under `max_tile`, then the
    smallest `align`-aligned tile covering the (aligned) axis.
    Returns (tile, padded_size) with padded_size % tile == 0."""
    size_a = _round_up(max(int(size), 1), align)
    cap = max(min(_round_up(max_tile, align), size_a), align)
    n_tiles = _cdiv(size_a, cap)
    tile = _round_up(_cdiv(size_a, n_tiles), align)
    return tile, n_tiles * tile


def _row_align(matmul_dtype) -> int:
    # Sub-32-bit operands pack along sublanes: bf16 packs 16 rows per vreg,
    # int8/fp8 pack 32.  Keep the M tile a multiple of the packed height.
    if matmul_dtype is None:
        return 8
    return max(8, 32 // max(jnp.dtype(matmul_dtype).itemsize, 1))


def _vmem_limit_bytes() -> int:
    # ~3/4 of physical VMEM (96 MiB on v5e/v6e's 128 MiB, 48 MiB on v7x's
    # 64 MiB) instead of the conservative scoped default.
    try:
        cap = int(pltpu.get_tpu_info().vmem_capacity_bytes)
    except Exception:  # non-TPU backend / older JAX: assume the smallest VMEM
        cap = 64 * 1024 * 1024
    return max(32 * 1024 * 1024, min((cap // 4) * 3, 96 * 1024 * 1024))


# --------------------------------------------------------------------------- #
# Kernels
# --------------------------------------------------------------------------- #
def _alpha_cell_kernel_single_k(xh_ref, w_ref, b_ref, h_ref, sh_ref,
                                hhat_ref, smooth_ref, *, alpha: float):
    """Whole K fits in one tile: no accumulator scratch, no K grid axis."""
    acc = jnp.dot(xh_ref[...], w_ref[...], preferred_element_type=jnp.float32)
    hhat_ref[...] = (acc + b_ref[...].astype(jnp.float32)).astype(hhat_ref.dtype)
    # Exponential smoothing of the *previous* hidden state (VPU, exact f32).
    h = h_ref[...].astype(jnp.float32)
    sh = sh_ref[...].astype(jnp.float32)
    smooth_ref[...] = (alpha * h + (1.0 - alpha) * sh).astype(smooth_ref.dtype)


def _alpha_cell_kernel_multi_k(xh_ref, w_ref, b_ref, h_ref, sh_ref,
                               hhat_ref, smooth_ref, acc_ref, *, alpha: float):
    """Grid point (i, j, k): accumulate one K slab of the fused matmul."""
    k = pl.program_id(2)

    @pl.when(k == 0)
    def _init():
        # Fold the bias into the accumulator init (saves an epilogue VPU add).
        acc_ref[...] = jnp.broadcast_to(
            b_ref[...].astype(jnp.float32), acc_ref.shape)

    acc_ref[...] += jnp.dot(xh_ref[...], w_ref[...],
                            preferred_element_type=jnp.float32)

    @pl.when(k == pl.num_programs(2) - 1)
    def _finalize():
        hhat_ref[...] = acc_ref[...].astype(hhat_ref.dtype)
        h = h_ref[...].astype(jnp.float32)
        sh = sh_ref[...].astype(jnp.float32)
        smooth_ref[...] = (alpha * h + (1.0 - alpha) * sh).astype(smooth_ref.dtype)


# --------------------------------------------------------------------------- #
# Wrappers
# --------------------------------------------------------------------------- #
def prepare_alpha_rnn_cell(phi, hidden_weights, bias, alpha=0.5, *,
                           matmul_dtype=jnp.bfloat16,
                           tn_max=512, tk_max=1024,
                           split_n_for_megacore=True):
    """One-time (per model) weight preparation, hoisted out of the step.

    Fuses/transposes the two weight matrices, casts to the MXU operand dtype,
    and zero-pads to the balanced (tn, tk) tiling.  Returns a dict consumed by
    alpha_rnn_cell_step.  phi: (H, I), hidden_weights: (H, H), bias: (H,).
    """
    H, I = phi.shape
    assert hidden_weights.shape == (H, H) and bias.shape == (H,)
    K = I + H

    # Balanced, lane-dense tiles for the N (hidden) and K (I+H) axes.
    tn, Np = _balanced_tile(H, tn_max, 128)
    if split_n_for_megacore and Np // tn < 2 and Np >= 256:
        # Small-batch grids collapse to M grid == 1; give the "parallel" N
        # axis >= 2 tiles (padding-free) so a 2-TensorCore chip (v7x) can
        # shard it instead of idling one core.
        for cand in range((Np // 2) // 128 * 128, 0, -128):
            if Np % cand == 0:
                tn = cand
                break
    tk, Kp = _balanced_tile(K, tk_max, 128)

    # h_hat = [x | hidden] @ [phi^T ; W_h^T] + bias — transpose/concat ONCE.
    w_fused = jnp.concatenate([phi.T, hidden_weights.T], axis=0)     # (K, H)
    if matmul_dtype is not None:
        w_fused = w_fused.astype(matmul_dtype)
    w_p = jnp.pad(w_fused, ((0, Kp - K), (0, Np - H)))
    b_p = jnp.pad(bias.reshape(1, H).astype(jnp.float32), ((0, 0), (0, Np - H)))

    return dict(w=w_p, b=b_p, alpha=float(alpha),
                input_size=I, hidden_size=H, K=K,
                tn=tn, tk=tk, Np=Np, Kp=Kp, matmul_dtype=matmul_dtype)


def alpha_rnn_cell_step(params, x, hidden, smoothed_hidden, *,
                        tm_max=512, stream_buffers=3):
    """One AlphaRNNCell forward step with pre-prepared weights.

    x: (B, I), hidden/smoothed_hidden: (B, H).  Returns (h_hat, smoothed_h).
    """
    B, I = x.shape
    H = params["hidden_size"]
    assert I == params["input_size"]
    assert hidden.shape == (B, H) and smoothed_hidden.shape == (B, H)
    K, Kp, Np = params["K"], params["Kp"], params["Np"]
    tn, tk = params["tn"], params["tk"]
    matmul_dtype = params["matmul_dtype"]
    alpha = params["alpha"]
    out_dtype = x.dtype

    tm, Mp = _balanced_tile(B, tm_max, _row_align(matmul_dtype))

    # Per-step data prep: just the cheap [x | hidden] concat, cast and pads.
    xh = jnp.concatenate([x, hidden], axis=1)                        # (B, K)
    if matmul_dtype is not None:
        xh = xh.astype(matmul_dtype)
    xh_p = jnp.pad(xh, ((0, Mp - B), (0, Kp - K)))
    h_p = jnp.pad(hidden, ((0, Mp - B), (0, Np - H)))
    sh_p = jnp.pad(smoothed_hidden, ((0, Mp - B), (0, Np - H)))

    nm, nn, nk = Mp // tm, Np // tn, Kp // tk
    out_shape = (jax.ShapeDtypeStruct((Mp, Np), out_dtype),   # h_hat
                 jax.ShapeDtypeStruct((Mp, Np), out_dtype))   # smoothed_h

    def _spec(shape, index_map, buffers, use_pm):
        if use_pm and buffers is not None:
            return pl.BlockSpec(shape, index_map,
                                pipeline_mode=pl.Buffered(buffers))
        return pl.BlockSpec(shape, index_map)

    def _run(use_pm):
        if nk == 1:
            kernel = functools.partial(_alpha_cell_kernel_single_k, alpha=alpha)
            grid = (nm, nn)
            in_specs = [
                _spec((tm, Kp), lambda i, j: (i, 0), stream_buffers, use_pm),
                _spec((Kp, tn), lambda i, j: (0, j), stream_buffers, use_pm),
                pl.BlockSpec((1, tn), lambda i, j: (0, j)),
                pl.BlockSpec((tm, tn), lambda i, j: (i, j)),
                pl.BlockSpec((tm, tn), lambda i, j: (i, j)),
            ]
            out_specs = (pl.BlockSpec((tm, tn), lambda i, j: (i, j)),
                         pl.BlockSpec((tm, tn), lambda i, j: (i, j)))
            scratch_shapes = []
            dims = ("parallel", "parallel")
        else:
            kernel = functools.partial(_alpha_cell_kernel_multi_k, alpha=alpha)
            grid = (nm, nn, nk)
            in_specs = [
                # Streamed matmul operands: deeper buffering hides HBM latency.
                _spec((tm, tk), lambda i, j, k: (i, k), stream_buffers, use_pm),
                _spec((tk, tn), lambda i, j, k: (k, j), stream_buffers, use_pm),
                # k-invariant operands: single-buffer to save VMEM.
                _spec((1, tn), lambda i, j, k: (0, j), 1, use_pm),
                _spec((tm, tn), lambda i, j, k: (i, j), 1, use_pm),
                _spec((tm, tn), lambda i, j, k: (i, j), 1, use_pm),
            ]
            out_specs = (_spec((tm, tn), lambda i, j, k: (i, j), 1, use_pm),
                         _spec((tm, tn), lambda i, j, k: (i, j), 1, use_pm))
            scratch_shapes = [pltpu.VMEM((tm, tn), jnp.float32)]
            dims = ("parallel", "parallel", "arbitrary")

        return pl.pallas_call(
            kernel,
            out_shape=out_shape,
            grid=grid,
            in_specs=in_specs,
            out_specs=out_specs,
            scratch_shapes=scratch_shapes,
            compiler_params=pltpu.CompilerParams(
                dimension_semantics=dims,
                vmem_limit_bytes=_vmem_limit_bytes(),
            ),
        )(xh_p, params["w"], params["b"], h_p, sh_p)

    use_pm = hasattr(pl, "Buffered")
    try:
        h_hat_p, smooth_p = _run(use_pm)
    except Exception:
        if not use_pm:
            raise
        # Fallback for JAX versions without BlockSpec.pipeline_mode support.
        h_hat_p, smooth_p = _run(False)

    return h_hat_p[:B, :H], smooth_p[:B, :H]


def alpha_rnn_cell(x, hidden, smoothed_hidden, phi, hidden_weights, bias,
                   alpha=0.5, *, matmul_dtype=jnp.bfloat16,
                   tm_max=512, tn_max=512, tk_max=1024,
                   split_n_for_megacore=True, stream_buffers=3):
    """Convenience single-call API (prepare + step).  For recurrent use, call
    prepare_alpha_rnn_cell once and alpha_rnn_cell_step per timestep."""
    params = prepare_alpha_rnn_cell(
        phi, hidden_weights, bias, alpha,
        matmul_dtype=matmul_dtype, tn_max=tn_max, tk_max=tk_max,
        split_n_for_megacore=split_n_for_megacore)
    return alpha_rnn_cell_step(params, x, hidden, smoothed_hidden,
                               tm_max=tm_max, stream_buffers=stream_buffers)


# --------------------------------------------------------------------------- #
# Demo / self-test
# --------------------------------------------------------------------------- #
def _kaiming_uniform(key, shape, fan_in, dtype=jnp.float32):
    # nn.init.kaiming_uniform_ with a=0: bound = sqrt(6 / fan_in).
    bound = math.sqrt(6.0 / fan_in)
    return jax.random.uniform(key, shape, dtype=dtype, minval=-bound, maxval=bound)


if __name__ == "__main__":
    input_size, hidden_size, batch, alpha = 16, 32, 2, 0.5

    key = jax.random.PRNGKey(0)
    k_phi, k_w, k_b, k_x, k_h, k_sh, k2 = jax.random.split(key, 7)

    phi = _kaiming_uniform(k_phi, (hidden_size, input_size), fan_in=input_size)
    hidden_weights = _kaiming_uniform(k_w, (hidden_size, hidden_size),
                                      fan_in=hidden_size)
    bias = 0.1 * jax.random.normal(k_b, (hidden_size,), jnp.float32)

    x = jax.random.normal(k_x, (batch, input_size), jnp.float32)
    hidden = jax.random.normal(k_h, (batch, hidden_size), jnp.float32)
    smoothed_hidden = jax.random.normal(k_sh, (batch, hidden_size), jnp.float32)

    with jax.default_matmul_precision("highest"):
        h_hat_ref = x @ phi.T + hidden @ hidden_weights.T + bias
    smoothed_ref = alpha * hidden + (1.0 - alpha) * smoothed_hidden

    # --- Hoisted-weights path, f32 MXU operands (single-K fast path). -------
    params_f32 = prepare_alpha_rnn_cell(phi, hidden_weights, bias, alpha,
                                        matmul_dtype=jnp.float32)
    h_hat, smoothed_h = alpha_rnn_cell_step(params_f32, x, hidden, smoothed_hidden)
    jax.block_until_ready((h_hat, smoothed_h))
    assert h_hat.shape == (batch, hidden_size)
    assert smoothed_h.shape == (batch, hidden_size)
    assert jnp.allclose(h_hat, h_hat_ref, atol=1e-3, rtol=1e-3)
    assert jnp.allclose(smoothed_h, smoothed_ref, atol=1e-6, rtol=1e-6)

    # Reuse the prepared weights for a second step (the recurrent pattern).
    h_hat2, smoothed_h2 = alpha_rnn_cell_step(params_f32, x, h_hat, smoothed_h)
    jax.block_until_ready((h_hat2, smoothed_h2))
    with jax.default_matmul_precision("highest"):
        h_hat2_ref = x @ phi.T + h_hat @ hidden_weights.T + bias
    smoothed2_ref = alpha * h_hat + (1.0 - alpha) * smoothed_h
    assert jnp.allclose(h_hat2, h_hat2_ref, atol=1e-3, rtol=1e-3)
    assert jnp.allclose(smoothed_h2, smoothed2_ref, atol=1e-6, rtol=1e-6)

    # --- Default bf16-operand MXU path (f32 accumulation, exact f32 blend). -
    h_hat_bf, smoothed_bf = alpha_rnn_cell(x, hidden, smoothed_hidden,
                                           phi, hidden_weights, bias, alpha)
    jax.block_until_ready((h_hat_bf, smoothed_bf))
    assert jnp.allclose(h_hat_bf, h_hat_ref, atol=5e-2, rtol=5e-2)
    assert jnp.allclose(smoothed_bf, smoothed_ref, atol=1e-6, rtol=1e-6)

    # --- Exercise the multi-K accumulator path (K > tk) on small shapes. ----
    I2, H2, B2 = 72, 72, 4
    kp2, kw2, kb2, kx2, kh2, ks2 = jax.random.split(k2, 6)
    phi2 = _kaiming_uniform(kp2, (H2, I2), fan_in=I2)
    hw2 = _kaiming_uniform(kw2, (H2, H2), fan_in=H2)
    bias2 = 0.1 * jax.random.normal(kb2, (H2,), jnp.float32)
    x2 = jax.random.normal(kx2, (B2, I2), jnp.float32)
    h2 = jax.random.normal(kh2, (B2, H2), jnp.float32)
    sh2 = jax.random.normal(ks2, (B2, H2), jnp.float32)
    h_hat_mk, smooth_mk = alpha_rnn_cell(x2, h2, sh2, phi2, hw2, bias2, alpha,
                                         matmul_dtype=jnp.float32, tk_max=128)
    jax.block_until_ready((h_hat_mk, smooth_mk))
    with jax.default_matmul_precision("highest"):
        h_hat_mk_ref = x2 @ phi2.T + h2 @ hw2.T + bias2
    smooth_mk_ref = alpha * h2 + (1.0 - alpha) * sh2
    assert jnp.allclose(h_hat_mk, h_hat_mk_ref, atol=1e-3, rtol=1e-3)
    assert jnp.allclose(smooth_mk, smooth_mk_ref, atol=1e-6, rtol=1e-6)

    print("KERNEL_OK")
</pallas_src>

<mosaic_0001>
module attributes {stable_mosaic.version = 11 : i64} {
  func.func @_alpha_cell_kernel_single_k(%arg0: i32, %arg1: i32, %arg2: memref<8x128xf32, #tpu.memory_space<vmem>>, %arg3: memref<128x128xf32, #tpu.memory_space<vmem>>, %arg4: memref<1x128xf32, #tpu.memory_space<vmem>>, %arg5: memref<8x128xf32, #tpu.memory_space<vmem>>, %arg6: memref<8x128xf32, #tpu.memory_space<vmem>>, %arg7: memref<8x128xf32, #tpu.memory_space<vmem>>, %arg8: memref<8x128xf32, #tpu.memory_space<vmem>>) attributes {dimension_semantics = [#tpu.dimension_semantics<parallel>, #tpu.dimension_semantics<parallel>], iteration_bounds = array<i64: 1, 1>, scalar_prefetch = 0 : i64, scratch_operands = 0 : i64, tpu.core_type = #tpu.core_type<tc>, window_params = [{transform_indices = @transform_0, window_bounds = array<i64: 8, 128>}, {transform_indices = @transform_1, window_bounds = array<i64: 128, 128>}, {transform_indices = @transform_2, window_bounds = array<i64: 1, 128>}, {transform_indices = @transform_3, window_bounds = array<i64: 8, 128>}, {transform_indices = @transform_4, window_bounds = array<i64: 8, 128>}, {transform_indices = @transform_5, window_bounds = array<i64: 8, 128>}, {transform_indices = @transform_6, window_bounds = array<i64: 8, 128>}]} {
    %c0 = arith.constant 0 : index
    %c0_0 = arith.constant 0 : index
    %0 = vector.load %arg2[%c0, %c0_0] : memref<8x128xf32, #tpu.memory_space<vmem>>, vector<8x128xf32>
    %c0_1 = arith.constant 0 : index
    %c0_2 = arith.constant 0 : index
    %1 = vector.load %arg3[%c0_1, %c0_2] : memref<128x128xf32, #tpu.memory_space<vmem>>, vector<128x128xf32>
    %cst = arith.constant dense<0.000000e+00> : vector<8x128xf32>
    %2 = tpu.matmul %0, %1, %cst {dimension_numbers = #tpu.dot_dimension_numbers<[1], [0], [0], [1], [0, 0, 1, 1], [], []>} : vector<8x128xf32>, vector<128x128xf32>, vector<8x128xf32> -> vector<8x128xf32>
    %c0_3 = arith.constant 0 : index
    %c0_4 = arith.constant 0 : index
    %3 = vector.load %arg4[%c0_3, %c0_4] : memref<1x128xf32, #tpu.memory_space<vmem>>, vector<1x128xf32>
    %4 = vector.broadcast %3 : vector<1x128xf32> to vector<8x128xf32>
    %5 = arith.addf %2, %4 : vector<8x128xf32>
    %c0_5 = arith.constant 0 : index
    %c0_6 = arith.constant 0 : index
    %6 = vector.load %arg7[%c0_5, %c0_6] : memref<8x128xf32, #tpu.memory_space<vmem>>, vector<8x128xf32>
    tpu.vector_store %arg7[%c0_5, %c0_6], %5 {strides = array<i32>} : memref<8x128xf32, #tpu.memory_space<vmem>>, vector<8x128xf32>,
    %c0_7 = arith.constant 0 : index
    %c0_8 = arith.constant 0 : index
    %7 = vector.load %arg5[%c0_7, %c0_8] : memref<8x128xf32, #tpu.memory_space<vmem>>, vector<8x128xf32>
    %c0_9 = arith.constant 0 : index
    %c0_10 = arith.constant 0 : index
    %8 = vector.load %arg6[%c0_9, %c0_10] : memref<8x128xf32, #tpu.memory_space<vmem>>, vector<8x128xf32>
    %cst_11 = arith.constant 5.000000e-01 : f32
    %9 = vector.broadcast %cst_11 : f32 to vector<8x128xf32>
    %10 = arith.mulf %9, %7 : vector<8x128xf32>
    %cst_12 = arith.constant 5.000000e-01 : f32
    %11 = vector.broadcast %cst_12 : f32 to vector<8x128xf32>
    %12 = arith.mulf %11, %8 : vector<8x128xf32>
    %13 = arith.addf %10, %12 : vector<8x128xf32>
    %c0_13 = arith.constant 0 : index
    %c0_14 = arith.constant 0 : index
    %14 = vector.load %arg8[%c0_13, %c0_14] : memref<8x128xf32, #tpu.memory_space<vmem>>, vector<8x128xf32>
    tpu.vector_store %arg8[%c0_13, %c0_14], %13 {strides = array<i32>} : memref<8x128xf32, #tpu.memory_space<vmem>>, vector<8x128xf32>,
    return
  }
  func.func @transform_0(%arg0: i32, %arg1: i32) -> (i32, i32) {
    %c0_i32 = arith.constant 0 : i32
    %c0_i32_0 = arith.constant 0 : i32
    return %arg0, %c0_i32 : i32, i32
  }
  func.func @transform_1(%arg0: i32, %arg1: i32) -> (i32, i32) {
    %c0_i32 = arith.constant 0 : i32
    %c0_i32_0 = arith.constant 0 : i32
    return %c0_i32, %arg1 : i32, i32
  }
  func.func @transform_2(%arg0: i32, %arg1: i32) -> (i32, i32) {
    %c0_i32 = arith.constant 0 : i32
    %c0_i32_0 = arith.constant 0 : i32
    return %c0_i32, %arg1 : i32, i32
  }
  func.func @transform_3(%arg0: i32, %arg1: i32) -> (i32, i32) {
    %c0_i32 = arith.constant 0 : i32
    return %arg0, %arg1 : i32, i32
  }
  func.func @transform_4(%arg0: i32, %arg1: i32) -> (i32, i32) {
    %c0_i32 = arith.constant 0 : i32
    return %arg0, %arg1 : i32, i32
  }
  func.func @transform_5(%arg0: i32, %arg1: i32) -> (i32, i32) {
    %c0_i32 = arith.constant 0 : i32
    return %arg0, %arg1 : i32, i32
  }
  func.func @transform_6(%arg0: i32, %arg1: i32) -> (i32, i32) {
    %c0_i32 = arith.constant 0 : i32
    return %arg0, %arg1 : i32, i32
  }
}

</mosaic_0001>

<bundles_post_ra>
// kernel: tpu_custom_call.1
= control target key start
LH: loop header
LB: loop body
LE: loop exit
PB: predicated region body
PF: predicated region fallthrough
CT: control target
= control target key end

     0   :  { %12 = vsyncpa [#allocation3], 0  ;;  %s508_s0 = inlined_call_operand.hbm [shape: f32[8,128], index: 0, kind: input, shape index: {}]   ;;  %s509_s1 = inlined_call_operand.hbm [shape: f32[128,128], index: 1, kind: input, shape index: {}]   ;;  %s510_s2 = inlined_call_operand.vmem [shape: f32[1,128], index: 2, kind: input, shape index: {}]   ;;  %s511_s3 = inlined_call_operand.vmem [shape: f32[8,128], index: 3, kind: input, shape index: {}]   ;;  %s512_s4 = inlined_call_operand.hbm [shape: f32[8,128], index: 4, kind: input, shape index: {}]   ;;  %s513_s5 = inlined_call_operand.hbm [shape: f32[8,128], index: 5, kind: output, shape index: {0}]   ;;  %s514_s6 = inlined_call_operand.hbm [shape: f32[8,128], index: 6, kind: output, shape index: {1}]  }
   0x1   :  { %13 = vsyncpa [#allocation6], 0 }
   0x2   :  { %14 = vsyncpa [#allocation4], 0 }
   0x3   :  { %15 = vsyncpa [#allocation10], 0  ;;  %s397_s21 = smov [#allocation5]   ;;  %s279_s25 = scalar_lea.hbm %s509_s1, 2048 }
   0x4   :  { %s31_s22 = sshll.u32 %s397_s21, 4  ;;  %p280_p0 = scmp.ne.s32.totalorder %s509_s1, %s279_s25  ;;  %s32_s22 = int_to_ptr.vmem [resolvable:$true] %s31_s22 }
   0x5   :  { %p283_p1 = scmp.lt.u32.totalorder %s279_s25, %s509_s1 }
   0x7   :  { %p285_p2 = pnand %p283_p1, %p280_p0 }
   0x9   :  { %288 = shalt.err (!%p285_p2)
}
   0xa   :  { %s289_s30 = scalar_lea.vmem %s32_s22, 2048  ;;  %p294_p4 = scmp.lt.s32.totalorder %s32_s22, %s32_s22 }
   0xb   :  { %p290_p3 = scmp.ne.s32.totalorder %s32_s22, %s289_s30  ;;  %p295_p5 = scmp.lt.s32.totalorder %s289_s30, %s289_s30 }
   0xd   :  { %p296_p6 = por %p295_p5, %p294_p4 }
   0xf   :  { %p297_p7 = pnand %p296_p6, %p290_p3 }
  0x11   :  { %300 = shalt.err (!%p297_p7)
}
  0x12   :  { %s398_s7 = smov 128   ;;  %s399_s8 = smov 8  }
  0x13   :  { %37 = dma.hbm_to_vmem [thread:$0]  %s509_s1, 2048, %s32_s22, [#allocation6], %s398_s7, %s398_s7, %s399_s8  }
  0x14   :  { %s400_s11 = smov [#allocation2]   ;;  %s401_s13 = smov [#allocation7]  }
  0x15   :  { %s22_s12 = sshll.u32 %s400_s11, 4  ;;  %s48_s14 = sshll.u32 %s401_s13, 4  ;;  %s23_s12 = int_to_ptr.vmem [resolvable:$true] %s22_s12  ;;  %s49_s14 = int_to_ptr.vmem [resolvable:$true] %s48_s14 }
  0x16   :  { %s301_s17 = scalar_lea.hbm %s508_s0, 128 }
  0x17   :  { %p302_p8 = scmp.ne.s32.totalorder %s508_s0, %s301_s17  ;;  %p305_p9 = scmp.lt.u32.totalorder %s301_s17, %s508_s0 }
  0x19   :  { %p307_p10 = pnand %p305_p9, %p302_p8 }
  0x1b   :  { %310 = shalt.err (!%p307_p10)
}
  0x1c   :  { %s311_s1 = scalar_lea.vmem %s23_s12, 128  ;;  %p316_p12 = scmp.lt.s32.totalorder %s23_s12, %s23_s12 }
  0x1d   :  { %p312_p11 = scmp.ne.s32.totalorder %s23_s12, %s311_s1  ;;  %p317_p13 = scmp.lt.s32.totalorder %s311_s1, %s311_s1 }
  0x1f   :  { %p318_p0 = por %p317_p13, %p316_p12 }
  0x21   :  { %p319_p1 = pnand %p318_p0, %p312_p11 }
  0x23   :  { %322 = shalt.err (!%p319_p1)
}
  0x24   :  { %25 = dma.hbm_to_vmem [thread:$0]  %s508_s0, 128, %s23_s12, [#allocation3]  }
  0x25   :  { %s323_s26 = scalar_lea.hbm %s512_s4, 128 }
  0x26   :  { %p324_p2 = scmp.ne.s32.totalorder %s512_s4, %s323_s26  ;;  %p327_p3 = scmp.lt.u32.totalorder %s323_s26, %s512_s4 }
  0x28   :  { %p329_p4 = pnand %p327_p3, %p324_p2 }
  0x2a   :  { %332 = shalt.err (!%p329_p4)
}
  0x2b   :  { %s333_s7 = scalar_lea.vmem %s49_s14, 128  ;;  %p338_p6 = scmp.lt.s32.totalorder %s49_s14, %s49_s14 }
  0x2c   :  { %p334_p5 = scmp.ne.s32.totalorder %s49_s14, %s333_s7  ;;  %p339_p7 = scmp.lt.s32.totalorder %s333_s7, %s333_s7 }
  0x2e   :  { %p340_p8 = por %p339_p7, %p338_p6 }
  0x30   :  { %p341_p9 = pnand %p340_p8, %p334_p5 }
  0x32   :  { %344 = shalt.err (!%p341_p9)
}
  0x33   :  { %51 = dma.hbm_to_vmem [thread:$0]  %s512_s4, 128, %s49_s14, [#allocation6]  }
  0x34   :  { %389 = dma.done.wait [#allocation3], 128  }
  0x35   :  { %390 = vsyncadd [#allocation3], 4294967168 }
  0x36   :  { %391 = dma.done.wait [#allocation6], 2176  }
  0x37   :  { %392 = vsyncadd [#allocation6], 4294965120  ;;  %v402_v0 = vmov 0.0|0.0   ;;  %vm403_vm0 = vmmov 0   ;;  %v404_v1 = vmov 0.0   ;;  %v62_v2 = vld [vmem:[#allocation5] sm:$0xff] }
  0x38   :  { %245 = vmatprep.subr.bf16.mxu0 %v402_v0  ;;  %242 = vmatprep.mubr.msk.f32.mxu0 %vm403_vm0, %v404_v1  ;;  %v63_v3 = vld [vmem:[#allocation5 + $0x8] sm:$0xff]  ;;  %v64_v4 = vld [vmem:[#allocation5 + $0x10] sm:$0xff]  ;;  %v65_v6 = vld [vmem:[#allocation5 + $0x18] sm:$0xff]  ;;  %s405_s10 = smov [#allocation9]  }
  0x39   :  { %v246_v5 = vpack.c.bf16 %v63_v3, %v62_v2  ;;  %v249_v7 = vpack.c.bf16 %v65_v6, %v64_v4  ;;  %v66_v8 = vld [vmem:[#allocation5 + $0x20] sm:$0xff]  ;;  %v67_v9 = vld [vmem:[#allocation5 + $0x28] sm:$0xff]  ;;  %v68_v11 = vld [vmem:[#allocation5 + $0x30] sm:$0xff]  ;;  %s178_s11 = sshll.u32 %s405_s10, 4  ;;  %s179_s11 = int_to_ptr.vmem [resolvable:$true] %s178_s11 }
  0x3a   :  { %v252_v10 = vpack.c.bf16 %v67_v9, %v66_v8  ;;  %v69_v12 = vld [vmem:[#allocation5 + $0x38] sm:$0xff]  ;;  %v70_v14 = vld [vmem:[#allocation5 + $0x40] sm:$0xff]  ;;  %v71_v15 = vld [vmem:[#allocation5 + $0x48] sm:$0xff]  ;;  %s345_s12 = scalar_lea.vmem %s179_s11, 128  ;;  %p350_p11 = scmp.lt.s32.totalorder %s179_s11, %s179_s11 }
  0x3b   :  { %247 = vmatpush3.bf16.msra.mxu0 %v246_v5  ;;  %v255_v13 = vpack.c.bf16 %v69_v12, %v68_v11  ;;  %v258_v16 = vpack.c.bf16 %v71_v15, %v70_v14  ;;  %v72_v17 = vld [vmem:[#allocation5 + $0x50] sm:$0xff]  ;;  %v73_v18 = vld [vmem:[#allocation5 + $0x58] sm:$0xff]  ;;  %v74_v20 = vld [vmem:[#allocation5 + $0x60] sm:$0xff]  ;;  %p346_p10 = scmp.ne.s32.totalorder %s179_s11, %s345_s12  ;;  %p351_p12 = scmp.lt.s32.totalorder %s345_s12, %s345_s12 }
  0x3c   :  { %248 = vmatprep.subr.bf16.mxu0 %v402_v0  ;;  %v261_v19 = vpack.c.bf16 %v73_v18, %v72_v17  ;;  %v75_v21 = vld [vmem:[#allocation5 + $0x68] sm:$0xff]  ;;  %v76_v23 = vld [vmem:[#allocation5 + $0x70] sm:$0xff]  ;;  %v77_v24 = vld [vmem:[#allocation5 + $0x78] sm:$0xff] }
  0x3d   :  { %v264_v22 = vpack.c.bf16 %v75_v21, %v74_v20  ;;  %v267_v25 = vpack.c.bf16 %v77_v24, %v76_v23  ;;  %v61_v26 = vld [vmem:[#allocation2] sm:$0xff]  ;;  %v157_v28 = vld [vmem:[#allocation7] sm:$0xff]  ;;  %p352_p13 = por %p351_p12, %p350_p11 }
  0x3e   :  { %v156_v27 = vld [vmem:[%s511_s3] sm:$0xff]  ;;  %v159_v30 = vmul.f32 0.5, %v157_v28 }
  0x3f   :  { %250 = vmatpush3.bf16.msra.mxu0 %v249_v7  ;;  %v158_v29 = vmul.f32 0.5, %v156_v27  ;;  %p353_p0 = pnand %p352_p13, %p346_p10 }
  0x40   :  { %251 = vmatprep.subr.bf16.mxu0 %v402_v0 }
  0x41   :  { %v160_v31 = vadd.f32 %v159_v30, %v158_v29 }
  0x43   :  { %253 = vmatpush3.bf16.msra.mxu0 %v252_v10  ;;  %161 = vst [vmem:[#allocation9] sm:$0xff] %v160_v31 }
  0x44   :  { %254 = vmatprep.subr.bf16.mxu0 %v402_v0 }
  0x47   :  { %256 = vmatpush3.bf16.msra.mxu0 %v255_v13 }
  0x48   :  { %257 = vmatprep.subr.bf16.mxu0 %v402_v0 }
  0x4b   :  { %259 = vmatpush3.bf16.msra.mxu0 %v258_v16 }
  0x4c   :  { %260 = vmatprep.subr.bf16.mxu0 %v402_v0 }
  0x4f   :  { %262 = vmatpush3.bf16.msra.mxu0 %v261_v19 }
  0x50   :  { %263 = vmatprep.subr.bf16.mxu0 %v402_v0 }
  0x53   :  { %265 = vmatpush3.bf16.msra.mxu0 %v264_v22 }
  0x54   :  { %266 = vmatprep.subr.bf16.mxu0 %v402_v0 }
  0x57   :  { %268 = vmatpush3.bf16.msra.mxu0 %v267_v25 }
  0x5a   :  { %243 = vmatmul.mubr.f32.vlgmr.msra.gmra.mrb[0].mxu0 %v61_v26 }
  0x5b   :  { %356 = shalt.err (!%p353_p0)
}
  0x5c   :  { %s357_s15 = scalar_lea.hbm %s514_s6, 128 }
  0x5d   :  { %p358_p1 = scmp.ne.s32.totalorder %s514_s6, %s357_s15  ;;  %p361_p2 = scmp.lt.u32.totalorder %s357_s15, %s514_s6 }
  0x5f   :  { %p363_p3 = pnand %p361_p2, %p358_p1 }
  0x61   :  { %366 = shalt.err (!%p363_p3)
}
  0x62   :  { %181 = dma.vmem_to_hbm [thread:$0]  %s179_s11, 128, %s514_s6, [#allocation10]   ;;  %v192_v32 = vld [vmem:[%s510_s2] ss:$0 sm:$0xff] }
  0x63   :  { %s406_s22 = smov [#allocation8]  }
  0x64   :  { %s168_s23 = sshll.u32 %s406_s22, 4  ;;  %s169_s23 = int_to_ptr.vmem [resolvable:$true] %s168_s23 }
  0x65   :  { %s367_s24 = scalar_lea.vmem %s169_s23, 128  ;;  %p372_p5 = scmp.lt.s32.totalorder %s169_s23, %s169_s23 }
  0x66   :  { %p368_p4 = scmp.ne.s32.totalorder %s169_s23, %s367_s24  ;;  %p373_p6 = scmp.lt.s32.totalorder %s367_s24, %s367_s24 }
  0x68   :  { %p374_p7 = por %p373_p6, %p372_p5 }
  0x6a   :  { %p375_p8 = pnand %p374_p7, %p368_p4 }
 0x12d   :  { %v151_v33 = vpop.f32.mrb[0].mxu0 }
 0x12e   :  { %v152_v34 = vadd.f32 %v192_v32, %v151_v33  ;;  %v244_v35 = vpop.f32.mrb[1].mxu0 }
 0x130   :  { %155 = vst [vmem:[#allocation8] sm:$0xff] %v152_v34 }
 0x131   :  { %378 = shalt.err (!%p375_p8)
}
 0x132   :  { %s379_s26 = scalar_lea.hbm %s513_s5, 128 }
 0x133   :  { %p380_p9 = scmp.ne.s32.totalorder %s513_s5, %s379_s26  ;;  %p383_p10 = scmp.lt.u32.totalorder %s379_s26, %s513_s5 }
 0x135   :  { %p385_p11 = pnand %p383_p10, %p380_p9 }
 0x137   :  { %388 = shalt.err (!%p385_p11)
}
 0x138   :  { %171 = dma.vmem_to_hbm [thread:$0]  %s169_s23, 128, %s513_s5, [#allocation4]  }
 0x139   :  { %393 = dma.done.wait [#allocation4], 128  }
 0x13a   :  { %394 = vsyncadd [#allocation4], 4294967168 }
 0x13b   :  { %395 = dma.done.wait [#allocation10], 128  }
 0x13c   :  { %396 = vsyncadd [#allocation10], 4294967168 }
 0x13d   :  { %188 = vsyncpa [#allocation3], 1 }
 0x13e   :  { %189 = vsyncpa [#allocation6], 1 }
 0x13f   :  { %190 = vsyncpa [#allocation4], 1 }
 0x140   :  { %191 = vsyncpa [#allocation10], 1 }

</bundles_post_ra>
